<compile_context>
chip_gen: v7x
topology: tpu7x:2x2x1
jax: 0.10.0
libtpu: 0.0.40
codegen_flags: <defaults>
</compile_context>

<pallas_src>
import functools

import numpy as np
import jax
import jax.numpy as jnp
from jax.experimental import pallas as pl
from jax.experimental.pallas import tpu as pltpu


# --------------------------------------------------------------------------
# Deterministic orthonormal initializer (numpy port of the PyTorch helper).
# --------------------------------------------------------------------------
def orthonormal_initializer(output_size, input_size, seed=0):
    rng = np.random.RandomState(seed)
    I = np.eye(output_size)
    lr = 0.1
    eps = 0.05 / (output_size + input_size)
    success = False
    tries = 0
    Q = None
    while not success and tries < 10:
        Q = rng.randn(input_size, output_size) / np.sqrt(output_size)
        for _ in range(100):
            QTQmI = Q.T.dot(Q) - I
            loss = np.sum(QTQmI ** 2 / 2)
            Q2 = Q ** 2
            Q -= lr * Q.dot(QTQmI) / (
                np.abs(Q2 + Q2.sum(axis=0, keepdims=True)
                       + Q2.sum(axis=1, keepdims=True) - 1) + eps)
            if np.max(Q) > 1e6 or loss > 1e6 or (not np.isfinite(loss)):
                tries += 1
                lr /= 2
                break
        else:
            success = True
            continue
        success = False
    if not success:
        Q = rng.randn(input_size, output_size) / np.sqrt(output_size)
    return np.transpose(Q.astype(np.float32))   # [output_size, input_size]


# --------------------------------------------------------------------------
# Helpers
# --------------------------------------------------------------------------
def _round_up(x, m):
    return ((x + m - 1) // m) * m


def _pad_dim_mxu(d):
    # Lane-dense + MXU-native padding: <=128 -> 128, otherwise multiple of 256
    # (v6e/v7x MXU is 2x256x256; 128-wide passes half-fill it).
    return 128 if d <= 128 else _round_up(d, 256)


def _largest_divisor_tile(dim, candidates=(1024, 512, 256, 128)):
    for c in candidates:
        if dim % c == 0:
            return c
    return dim


# Conservative budget incl. double buffering: fits v5e's 16 MiB default
# scoped-VMEM limit (v6e/v7x default is 32 MiB), so no vmem_limit_bytes needed.
_VMEM_BUDGET = 14 * 1024 * 1024
# Weight + bias (double-buffer-counted) must fit under this to take the
# VMEM-resident fast path.
_RESIDENT_W_BUDGET = 6 * 1024 * 1024


def _select_tm_resident(M, K_pad, N_pad, x_bytes, resident_bytes,
                        budget=_VMEM_BUDGET, must_divide=None):
    """Pick tm for the weights-resident path.

    Rule: never below 128; minimize M padding; among minimal-padding choices
    prefer one that yields >= 2 grid blocks (feeds both v7x TensorCores),
    then the largest tile (fewest grid-step overheads)."""
    cands = []
    for tm in (1024, 512, 256, 128):
        if must_divide is not None and must_divide % tm != 0:
            continue
        per_tile = 2 * tm * K_pad * x_bytes + 2 * tm * N_pad * 4
        if resident_bytes + per_tile > budget:
            continue
        m_pad = _round_up(max(M, 1), tm)
        cands.append((m_pad, tm))
    if not cands:
        return None
    min_pad = min(mp for mp, _ in cands)
    best = [(mp, tm) for mp, tm in cands if mp == min_pad]
    multi = [(mp, tm) for mp, tm in best if mp // tm >= 2]
    pool = multi if multi else best
    return max(tm for _, tm in pool)


def _select_tiles_ktiled(M, K_pad, N_pad, xb, budget=_VMEM_BUDGET, max_tk=None):
    """Tile selection for the 3-D fallback grid (weights not VMEM-resident)."""
    tm_cands = (512, 256, 128)
    m_pads = [(_round_up(max(M, 1), t), t) for t in tm_cands]
    min_pad = min(mp for mp, _ in m_pads)
    tm = max(t for mp, t in m_pads if mp == min_pad)

    tk_cands = (1024, 512, 256, 128)
    if max_tk is not None:
        tk_cands = tuple(c for c in tk_cands if c <= max_tk) or (128,)
    tk = _largest_divisor_tile(K_pad, tk_cands)
    tn = _largest_divisor_tile(N_pad, (1024, 512, 256, 128))

    def vmem(tm_, tk_, tn_):
        return (2 * tm_ * tk_ * xb      # x tile (double-buffered)
                + 2 * tk_ * tn_ * xb    # W^T tile
                + 2 * tn_ * 4           # bias tile
                + 2 * tm_ * tn_ * 4)    # f32 output/accumulator tile

    while vmem(tm, tk, tn) > budget:
        if tk > 256 and K_pad % (tk // 2) == 0:
            tk //= 2
        elif tn > 256 and N_pad % (tn // 2) == 0:
            tn //= 2
        elif tm > 128:
            tm //= 2
        elif tk > 128 and K_pad % (tk // 2) == 0:
            tk //= 2
        elif tn > 128 and N_pad % (tn // 2) == 0:
            tn //= 2
        else:
            break
    return tm, tk, tn


# --------------------------------------------------------------------------
# Kernels
# --------------------------------------------------------------------------
def _nl_resident_kernel(x_ref, wt_ref, b_ref, o_ref, *, activation,
                        compute_dtype):
    # x_ref  : [tm, K_pad]      f32 (cast here) or pre-cast bf16 tile of x
    # wt_ref : [K_pad, N_pad]   VMEM-resident W^T (constant index_map)
    # b_ref  : [1,  N_pad]      f32 bias
    # o_ref  : [tm, N_pad]      output tile
    y = jnp.dot(x_ref[...].astype(compute_dtype), wt_ref[...],
                preferred_element_type=jnp.float32)
    y = y + b_ref[...]
    if activation is not None:
        y = activation(y)
    o_ref[...] = y.astype(o_ref.dtype)


def _nl_ktiled_kernel(x_ref, wt_ref, b_ref, o_ref, *, activation):
    # 3-D grid (i, j, k), k innermost & "arbitrary".  The f32 output block is
    # the accumulator (constant index across k => stays VMEM-resident):
    # initialized with the broadcast bias at k==0, activation at last k.
    k = pl.program_id(2)

    @pl.when(k == 0)
    def _init():
        o_ref[...] = jnp.broadcast_to(b_ref[...], o_ref.shape)

    o_ref[...] += jnp.dot(x_ref[...], wt_ref[...],
                          preferred_element_type=jnp.float32)

    if activation is not None:
        @pl.when(k == pl.num_programs(2) - 1)
        def _finalize():
            o_ref[...] = activation(o_ref[...])


# --------------------------------------------------------------------------
# Module wrapper
# --------------------------------------------------------------------------
class NonLinearPallas:
    """JAX/Pallas equivalent of the PyTorch NonLinear module."""

    # Dispatch to plain jnp below this many MACs (launch overhead dominates).
    _PALLAS_MIN_MACS = 1 << 20

    def __init__(self, input_size, hidden_size, activation=None, seed=0,
                 compute_dtype=jnp.bfloat16, out_dtype=jnp.float32):
        self.input_size = int(input_size)
        self.hidden_size = int(hidden_size)
        self.compute_dtype = jnp.dtype(compute_dtype)
        self.out_dtype = jnp.dtype(out_dtype)

        if activation is None:
            self._activate = None
        elif activation == "relu":
            self._activate = lambda v: jnp.maximum(v, 0.0)
        elif activation == "tanh":
            self._activate = jnp.tanh
        elif callable(activation):
            self._activate = activation        # must be jnp-traceable
        else:
            raise ValueError("activation must be None, 'relu', 'tanh' or callable")

        W = orthonormal_initializer(self.hidden_size, self.input_size, seed=seed)
        self.w_t_f32 = jnp.asarray(W.T)                       # [K, N] f32
        self.bias = jnp.zeros((1, self.hidden_size), jnp.float32)

        # MXU-native padded parameter copies.
        self.K_pad = _pad_dim_mxu(self.input_size)
        self.N_pad = _pad_dim_mxu(self.hidden_size)
        wt_pad = np.zeros((self.K_pad, self.N_pad), np.float32)
        wt_pad[:self.input_size, :self.hidden_size] = np.asarray(W.T)
        self.w_t_pad = jnp.asarray(wt_pad, dtype=self.compute_dtype)
        self.bias_pad = jnp.zeros((1, self.N_pad), jnp.float32)

        # jit the whole forward (pad + pallas_call + slice) so the cast/pad
        # producers fuse and the kernel isn't retraced per call.
        self._jit_forward = jax.jit(self._forward_impl, static_argnums=(3, 4, 5))

    # ---------------------------------------------------------------------
    def __call__(self, x, force_pallas=False, force_ktiled=False, max_tk=None):
        lead = x.shape[:-1]
        x2 = x.reshape(-1, self.input_size)
        y = self._jit_forward(x2, self.w_t_pad, self.bias_pad,
                              bool(force_pallas), bool(force_ktiled), max_tk)
        return y.reshape(*lead, self.hidden_size)

    # ---------------------------------------------------------------------
    def _forward_impl(self, x2, wt_pad, bias_pad, force_pallas, force_ktiled,
                      max_tk):
        M, K = x2.shape
        N = self.hidden_size
        K_pad, N_pad = self.K_pad, self.N_pad
        wb = self.compute_dtype.itemsize
        ob = self.out_dtype.itemsize

        # -- tiny problems: plain jnp (pallas launch overhead dominates) ----
        if (not force_pallas) and (M * K * N < self._PALLAS_MIN_MACS):
            y = x2.astype(jnp.float32) @ self.w_t_f32 + self.bias
            if self._activate is not None:
                y = self._activate(y)
            return y.astype(self.out_dtype)

        activation = self._activate

        # ================= weights-resident fast path ======================
        resident_bytes = 2 * K_pad * N_pad * wb + 2 * N_pad * 4
        use_resident = (not force_ktiled) and resident_bytes <= _RESIDENT_W_BUDGET

        if use_resident:
            # If no padding is needed at all, skip the wrapper-side cast+pad
            # HBM round trip and cast per-tile inside the kernel instead.
            no_pad = (K == K_pad) and (M % 128 == 0)
            x_bytes = x2.dtype.itemsize if no_pad else wb
            tm = _select_tm_resident(M, K_pad, N_pad, x_bytes, resident_bytes,
                                     must_divide=(M if no_pad else None))
            if tm is None:
                use_resident = False

        if use_resident:
            M_pad = _round_up(M, tm)
            if no_pad:
                x_p = x2
            else:
                x_p = jnp.pad(x2.astype(self.compute_dtype),
                              ((0, M_pad - M), (0, K_pad - K)))

            grid = (M_pad // tm,)
            cost = pl.CostEstimate(
                flops=2 * M_pad * K_pad * N_pad,
                transcendentals=(M_pad * N_pad) if activation is not None else 0,
                bytes_accessed=(M_pad * K_pad * x_p.dtype.itemsize
                                + K_pad * N_pad * wb      # W streamed once
                                + N_pad * 4
                                + M_pad * N_pad * ob))

            kernel = functools.partial(_nl_resident_kernel,
                                       activation=activation,
                                       compute_dtype=self.compute_dtype)
            out = pl.pallas_call(
                kernel,
                out_shape=jax.ShapeDtypeStruct((M_pad, N_pad), self.out_dtype),
                grid_spec=pltpu.PrefetchScalarGridSpec(
                    num_scalar_prefetch=0,
                    grid=grid,
                    in_specs=[
                        pl.BlockSpec((tm, K_pad), lambda i: (i, 0)),
                        pl.BlockSpec((K_pad, N_pad), lambda i: (0, 0)),
                        pl.BlockSpec((1, N_pad), lambda i: (0, 0)),
                    ],
                    out_specs=pl.BlockSpec((tm, N_pad), lambda i: (i, 0)),
                ),
                compiler_params=pltpu.CompilerParams(
                    dimension_semantics=("parallel",)),
                cost_estimate=cost,
            )(x_p, wt_pad, bias_pad)
            return out[:M, :N]

        # ================= K-tiled fallback (large weights) ================
        tm, tk, tn = _select_tiles_ktiled(M, K_pad, N_pad, wb, max_tk=max_tk)
        M_pad = _round_up(M, tm)
        # x is re-streamed once per N tile -> pre-cast to bf16 (pad fuses).
        x_p = jnp.pad(x2.astype(self.compute_dtype),
                      ((0, M_pad - M), (0, K_pad - K)))

        grid = (M_pad // tm, N_pad // tn, K_pad // tk)
        n_i, n_j, _ = grid
        cost = pl.CostEstimate(
            flops=2 * M_pad * K_pad * N_pad,
            transcendentals=(M_pad * N_pad) if activation is not None else 0,
            bytes_accessed=(M_pad * K_pad * wb * n_j      # x re-streamed per N tile
                            + K_pad * N_pad * wb * n_i    # W re-streamed per M tile
                            + N_pad * 4 * n_i
                            + M_pad * N_pad * 4))

        kernel = functools.partial(_nl_ktiled_kernel, activation=activation)
        out = pl.pallas_call(
            kernel,
            out_shape=jax.ShapeDtypeStruct((M_pad, N_pad), jnp.float32),
            grid_spec=pltpu.PrefetchScalarGridSpec(
                num_scalar_prefetch=0,
                grid=grid,
                in_specs=[
                    pl.BlockSpec((tm, tk), lambda i, j, k: (i, k)),
                    pl.BlockSpec((tk, tn), lambda i, j, k: (k, j)),
                    pl.BlockSpec((1, tn), lambda i, j, k: (0, j)),
                ],
                out_specs=pl.BlockSpec((tm, tn), lambda i, j, k: (i, j)),
            ),
            compiler_params=pltpu.CompilerParams(
                dimension_semantics=("parallel", "parallel", "arbitrary")),
            cost_estimate=cost,
        )(x_p, wt_pad, bias_pad)
        return out[:M, :N].astype(self.out_dtype)


# --------------------------------------------------------------------------
# Demo / correctness checks
# --------------------------------------------------------------------------
if __name__ == "__main__":
    # --- small shape: identity activation, single-tile grid (resident path) -
    batch, seq, input_size, hidden_size = 2, 8, 32, 32
    key = jax.random.PRNGKey(0)
    x = jax.random.normal(key, (batch, seq, input_size), dtype=jnp.float32)

    module = NonLinearPallas(input_size, hidden_size, activation=None, seed=0)
    y = jax.block_until_ready(module(x, force_pallas=True))

    # matched-precision reference (bf16 operands, f32 accumulation)
    x_bf = x.reshape(-1, input_size).astype(jnp.bfloat16).astype(jnp.float32)
    w_bf = module.w_t_pad[:input_size, :hidden_size].astype(jnp.float32)
    y_ref = (x_bf @ w_bf + module.bias).reshape(batch, seq, hidden_size)
    np.testing.assert_allclose(np.asarray(y), np.asarray(y_ref),
                               rtol=2e-3, atol=2e-3)

    # --- larger shape: tanh, multi-M-tile resident-weights path -------------
    b2, s2, d_in2, d_hid2 = 4, 160, 192, 320
    key2 = jax.random.PRNGKey(0)
    x2 = jax.random.normal(key2, (b2, s2, d_in2), dtype=jnp.float32)

    module2 = NonLinearPallas(d_in2, d_hid2, activation="tanh", seed=0)
    y2 = jax.block_until_ready(module2(x2, force_pallas=True))

    x2_bf = x2.reshape(-1, d_in2).astype(jnp.bfloat16).astype(jnp.float32)
    w2_bf = module2.w_t_pad[:d_in2, :d_hid2].astype(jnp.float32)
    y2_ref = jnp.tanh(x2_bf @ w2_bf + module2.bias).reshape(b2, s2, d_hid2)
    np.testing.assert_allclose(np.asarray(y2), np.asarray(y2_ref),
                               rtol=2e-3, atol=2e-3)

    # --- same module, forced K-tiled fallback path (exercises the 3-D grid,
    #     bias-folded init, in-place accumulation and multi-step K reduction) -
    y3 = jax.block_until_ready(
        module2(x2, force_pallas=True, force_ktiled=True, max_tk=128))
    np.testing.assert_allclose(np.asarray(y3), np.asarray(y2_ref),
                               rtol=2e-3, atol=2e-3)

    print("KERNEL_OK")
</pallas_src>

<mosaic_0001>
module attributes {stable_mosaic.version = 11 : i64} {
  func.func @_nl_resident_kernel(%arg0: i32, %arg1: memref<128x128xbf16, #tpu.memory_space<vmem>>, %arg2: memref<128x128xbf16, #tpu.memory_space<vmem>>, %arg3: memref<1x128xf32, #tpu.memory_space<vmem>>, %arg4: memref<128x128xf32, #tpu.memory_space<vmem>>) attributes {dimension_semantics = [#tpu.dimension_semantics<parallel>], iteration_bounds = array<i64: 1>, scalar_prefetch = 0 : i64, scratch_operands = 0 : i64, tpu.core_type = #tpu.core_type<tc>, window_params = [{transform_indices = @transform_0, window_bounds = array<i64: 128, 128>}, {pipeline_mode = #tpu.pipeline_mode<synchronous>, transform_indices = @transform_1, window_bounds = array<i64: 128, 128>}, {pipeline_mode = #tpu.pipeline_mode<synchronous>, transform_indices = @transform_2, window_bounds = array<i64: 1, 128>}, {transform_indices = @transform_3, window_bounds = array<i64: 128, 128>}]} {
    %c0 = arith.constant 0 : index
    %c0_0 = arith.constant 0 : index
    %0 = vector.load %arg1[%c0, %c0_0] : memref<128x128xbf16, #tpu.memory_space<vmem>>, vector<128x128xbf16>
    %c0_1 = arith.constant 0 : index
    %c0_2 = arith.constant 0 : index
    %1 = vector.load %arg2[%c0_1, %c0_2] : memref<128x128xbf16, #tpu.memory_space<vmem>>, vector<128x128xbf16>
    %cst = arith.constant dense<0.000000e+00> : vector<128x128xf32>
    %2 = tpu.matmul %0, %1, %cst {dimension_numbers = #tpu.dot_dimension_numbers<[1], [0], [0], [1], [0, 0, 1, 1], [], []>} : vector<128x128xbf16>, vector<128x128xbf16>, vector<128x128xf32> -> vector<128x128xf32>
    %c0_3 = arith.constant 0 : index
    %c0_4 = arith.constant 0 : index
    %3 = vector.load %arg3[%c0_3, %c0_4] : memref<1x128xf32, #tpu.memory_space<vmem>>, vector<1x128xf32>
    %4 = vector.broadcast %3 : vector<1x128xf32> to vector<128x128xf32>
    %5 = arith.addf %2, %4 : vector<128x128xf32>
    %c0_5 = arith.constant 0 : index
    %c0_6 = arith.constant 0 : index
    %6 = vector.load %arg4[%c0_5, %c0_6] : memref<128x128xf32, #tpu.memory_space<vmem>>, vector<128x128xf32>
    tpu.vector_store %arg4[%c0_5, %c0_6], %5 {strides = array<i32>} : memref<128x128xf32, #tpu.memory_space<vmem>>, vector<128x128xf32>,
    return
  }
  func.func @transform_0(%arg0: i32) -> (i32, i32) {
    %c0_i32 = arith.constant 0 : i32
    %c0_i32_0 = arith.constant 0 : i32
    return %arg0, %c0_i32 : i32, i32
  }
  func.func @transform_1(%arg0: i32) -> (i32, i32) {
    %c0_i32 = arith.constant 0 : i32
    %c0_i32_0 = arith.constant 0 : i32
    %c0_i32_1 = arith.constant 0 : i32
    return %c0_i32, %c0_i32_0 : i32, i32
  }
  func.func @transform_2(%arg0: i32) -> (i32, i32) {
    %c0_i32 = arith.constant 0 : i32
    %c0_i32_0 = arith.constant 0 : i32
    %c0_i32_1 = arith.constant 0 : i32
    return %c0_i32, %c0_i32_0 : i32, i32
  }
  func.func @transform_3(%arg0: i32) -> (i32, i32) {
    %c0_i32 = arith.constant 0 : i32
    %c0_i32_0 = arith.constant 0 : i32
    return %arg0, %c0_i32 : i32, i32
  }
}

</mosaic_0001>

<bundles_post_ra>
// kernel: _forward_impl.1
= control target key start
LH: loop header
LB: loop body
LE: loop exit
PB: predicated region body
PF: predicated region fallthrough
CT: control target
= control target key end

     0   :  { %s483_s1 = inlined_call_operand.vmem [shape: bf16[128,128], index: 1, kind: input, shape index: {}]   ;;  %s484_s0 = inlined_call_operand.vmem [shape: bf16[128,128], index: 0, kind: input, shape index: {}]   ;;  %s485_s2 = inlined_call_operand.vmem [shape: f32[1,128], index: 2, kind: input, shape index: {}]   ;;  %s486_s3 = inlined_call_operand.vmem [shape: f32[128,128], index: 3, kind: output, shape index: {}]  }
   0x1   :  { %v348_v0 = vld [vmem:[%s483_s1] sm:$0xff]   ;;  %v349_v1 = vld [vmem:[%s483_s1 + $0x8] sm:$0xff]   ;;  %v350_v2 = vld [vmem:[%s483_s1 + $0x10] sm:$0xff]  }
   0x2   :  { %300 = vmatprep.subr.bf16.mxu0 %v348_v0  ;;  %332 = vmatprep.subr.bf16.mxu1 %v348_v0  ;;  %v351_v3 = vld [vmem:[%s483_s1 + $0x18] sm:$0xff]   ;;  %v356_v4 = vld [vmem:[%s484_s0] sm:$0xff]   ;;  %v353_v7 = vld [vmem:[%s483_s1 + $0x28] sm:$0xff]  }
   0x3   :  { %301 = vmatpush3.bf16.msra.mxu0 %v348_v0  ;;  %340 = vmatpush3.bf16.msra.mxu1 %v348_v0  ;;  %v357_v5 = vld [vmem:[%s484_s0 + $0x20] sm:$0xff]   ;;  %v354_v8 = vld [vmem:[%s483_s1 + $0x30] sm:$0xff]   ;;  %v355_v9 = vld [vmem:[%s483_s1 + $0x38] sm:$0xff]  }
   0x4   :  { %302 = vmatprep.subr.bf16.mxu0 %v349_v1  ;;  %333 = vmatprep.subr.bf16.mxu1 %v349_v1  ;;  %v352_v6 = vld [vmem:[%s483_s1 + $0x20] sm:$0xff]   ;;  %v358_v10 = vld [vmem:[%s484_s0 + $0x8] sm:$0xff]   ;;  %v360_v12 = vld [vmem:[%s484_s0 + $0x10] sm:$0xff]  }
   0x5   :  { %316 = vmatprep.mubr.bf16.mxu0 %v356_v4  ;;  %324 = vmatprep.mubr.bf16.mxu1 %v357_v5  ;;  %v359_v11 = vld [vmem:[%s484_s0 + $0x28] sm:$0xff]   ;;  %v361_v13 = vld [vmem:[%s484_s0 + $0x30] sm:$0xff]   ;;  %v362_v14 = vld [vmem:[%s484_s0 + $0x18] sm:$0xff]  }
   0x6   :  { %v363_v15 = vld [vmem:[%s484_s0 + $0x38] sm:$0xff]   ;;  %v267_v16 = vld [vmem:[%s485_s2] ss:$0 sm:$0xff] }
   0x7   :  { %303 = vmatpush3.bf16.msra.mxu0 %v349_v1  ;;  %341 = vmatpush3.bf16.msra.mxu1 %v349_v1 }
   0x8   :  { %304 = vmatprep.subr.bf16.mxu0 %v350_v2  ;;  %334 = vmatprep.subr.bf16.mxu1 %v350_v2 }
   0xb   :  { %305 = vmatpush3.bf16.msra.mxu0 %v350_v2  ;;  %342 = vmatpush3.bf16.msra.mxu1 %v350_v2 }
   0xc   :  { %306 = vmatprep.subr.bf16.mxu0 %v351_v3  ;;  %335 = vmatprep.subr.bf16.mxu1 %v351_v3 }
   0xf   :  { %307 = vmatpush3.bf16.msra.mxu0 %v351_v3  ;;  %343 = vmatpush3.bf16.msra.mxu1 %v351_v3 }
  0x10   :  { %308 = vmatprep.subr.bf16.mxu0 %v352_v6  ;;  %336 = vmatprep.subr.bf16.mxu1 %v352_v6 }
  0x13   :  { %309 = vmatpush3.bf16.msra.mxu0 %v352_v6  ;;  %344 = vmatpush3.bf16.msra.mxu1 %v352_v6 }
  0x14   :  { %310 = vmatprep.subr.bf16.mxu0 %v353_v7  ;;  %337 = vmatprep.subr.bf16.mxu1 %v353_v7 }
  0x17   :  { %311 = vmatpush3.bf16.msra.mxu0 %v353_v7  ;;  %345 = vmatpush3.bf16.msra.mxu1 %v353_v7 }
  0x18   :  { %312 = vmatprep.subr.bf16.mxu0 %v354_v8  ;;  %338 = vmatprep.subr.bf16.mxu1 %v354_v8 }
  0x1b   :  { %313 = vmatpush3.bf16.msra.mxu0 %v354_v8  ;;  %346 = vmatpush3.bf16.msra.mxu1 %v354_v8 }
  0x1c   :  { %314 = vmatprep.subr.bf16.mxu0 %v355_v9  ;;  %339 = vmatprep.subr.bf16.mxu1 %v355_v9 }
  0x1f   :  { %315 = vmatpush3.bf16.msra.mxu0 %v355_v9  ;;  %347 = vmatpush3.bf16.msra.mxu1 %v355_v9 }
  0x22   :  { %317 = vmatmul.mubr.bf16.vlgmr.msra.gmra.mrb[0].mxu0 %v358_v10  ;;  %325 = vmatmul.mubr.bf16.vlgmr.msra.gmra.mrb[0].mxu1 %v359_v11 }
  0x23   :  { %320 = vmatprep.mubr.bf16.mxu0 %v360_v12  ;;  %328 = vmatprep.mubr.bf16.mxu1 %v361_v13 }
  0x2a   :  { %321 = vmatmul.mubr.bf16.gmra.mrb[4].mxu0 %v362_v14  ;;  %329 = vmatmul.mubr.bf16.gmra.mrb[4].mxu1 %v363_v15 }
  0xf5   :  { %v318_v17 = vpop.f32.mrb[0].mxu0  ;;  %v326_v18 = vpop.f32.mrb[0].mxu1 }
  0xf6   :  { %v193_v19 = vadd.f32 %v318_v17, %v267_v16  ;;  %v225_v20 = vadd.f32 %v326_v18, %v267_v16  ;;  %v184_v21 = vpop.f32.mrb[1].mxu0  ;;  %v216_v22 = vpop.f32.mrb[1].mxu1 }
  0xf7   :  { %v185_v23 = vadd.f32 %v267_v16, %v184_v21  ;;  %v217_v24 = vadd.f32 %v267_v16, %v216_v22  ;;  %v319_v25 = vpop.f32.mrb[2].mxu0  ;;  %v327_v26 = vpop.f32.mrb[2].mxu1 }
  0xf8   :  { %249 = vst [vmem:[%s486_s3 + $0x10] sm:$0xff] %v193_v19  ;;  %257 = vst [vmem:[%s486_s3 + $0x50] sm:$0xff] %v225_v20  ;;  %v196_v27 = vadd.f32 %v319_v25, %v267_v16  ;;  %v228_v28 = vadd.f32 %v327_v26, %v267_v16  ;;  %v187_v29 = vpop.f32.mrb[3].mxu0  ;;  %v219_v30 = vpop.f32.mrb[3].mxu1 }
  0xf9   :  { %247 = vst [vmem:[%s486_s3] sm:$0xff] %v185_v23  ;;  %255 = vst [vmem:[%s486_s3 + $0x40] sm:$0xff] %v217_v24  ;;  %v188_v31 = vadd.f32 %v267_v16, %v187_v29  ;;  %v220_v32 = vadd.f32 %v267_v16, %v219_v30 }
  0xfa   :  { %250 = vst [vmem:[%s486_s3 + $0x18] sm:$0xff] %v196_v27  ;;  %258 = vst [vmem:[%s486_s3 + $0x58] sm:$0xff] %v228_v28 }
  0xfb   :  { %248 = vst [vmem:[%s486_s3 + $0x8] sm:$0xff] %v188_v31  ;;  %256 = vst [vmem:[%s486_s3 + $0x48] sm:$0xff] %v220_v32 }
  0xfd   :  { %v322_v33 = vpop.f32.mrb[4].mxu0  ;;  %v330_v34 = vpop.f32.mrb[4].mxu1 }
  0xfe   :  { %v209_v35 = vadd.f32 %v322_v33, %v267_v16  ;;  %v241_v36 = vadd.f32 %v330_v34, %v267_v16  ;;  %v200_v37 = vpop.f32.mrb[5].mxu0  ;;  %v232_v38 = vpop.f32.mrb[5].mxu1 }
  0xff   :  { %v201_v39 = vadd.f32 %v267_v16, %v200_v37  ;;  %v233_v40 = vadd.f32 %v267_v16, %v232_v38  ;;  %v323_v41 = vpop.f32.mrb[6].mxu0  ;;  %v331_v42 = vpop.f32.mrb[6].mxu1 }
 0x100   :  { %253 = vst [vmem:[%s486_s3 + $0x30] sm:$0xff] %v209_v35  ;;  %261 = vst [vmem:[%s486_s3 + $0x70] sm:$0xff] %v241_v36  ;;  %v212_v43 = vadd.f32 %v323_v41, %v267_v16  ;;  %v244_v44 = vadd.f32 %v331_v42, %v267_v16  ;;  %v203_v45 = vpop.f32.mrb[7].mxu0  ;;  %v235_v46 = vpop.f32.mrb[7].mxu1 }
 0x101   :  { %251 = vst [vmem:[%s486_s3 + $0x20] sm:$0xff] %v201_v39  ;;  %259 = vst [vmem:[%s486_s3 + $0x60] sm:$0xff] %v233_v40  ;;  %v204_v47 = vadd.f32 %v267_v16, %v203_v45  ;;  %v236_v48 = vadd.f32 %v267_v16, %v235_v46 }
 0x102   :  { %254 = vst [vmem:[%s486_s3 + $0x38] sm:$0xff] %v212_v43  ;;  %262 = vst [vmem:[%s486_s3 + $0x78] sm:$0xff] %v244_v44 }
 0x103   :  { %252 = vst [vmem:[%s486_s3 + $0x28] sm:$0xff] %v204_v47  ;;  %260 = vst [vmem:[%s486_s3 + $0x68] sm:$0xff] %v236_v48 }

</bundles_post_ra>
